<compile_context>
chip_gen: v5e
topology: v5e:2x2
jax: 0.10.0
libtpu: 0.0.40
codegen_flags: <defaults>
</compile_context>

<pallas_src>
import functools

import jax
import jax.numpy as jnp
from jax.experimental import pallas as pl
from jax.experimental.pallas import tpu as pltpu


def _round_up(x, m):
    return ((x + m - 1) // m) * m


# ----------------------------------------------------------------------------
# Fused kernel: whole Conv1dStack for one (batch-group, L-tile) grid cell
# ----------------------------------------------------------------------------
def _fused_stack_kernel(*refs, layer_dims, apply_post, NB, T, W, S_pad, n_tiles):
    """refs layout:
         refs[0]   : x block (NB, C_in0, L_in_need)     [NCL, L on lanes]
         per layer : w_flat (C_out, K*C_in), bias (C_out, 1)
                     [+ bn_scale (C_out,1), bn_shift (C_out,1) if inner layer]
         refs[-1]  : output block (NB, C_out_last, T)
    """
    x_ref = refs[0]
    o_ref = refs[-1]
    p_refs = refs[1:-1]
    C0 = x_ref.shape[1]

    # ---- load this tile's input window per batch and lane-pack the batches ----
    if n_tiles == 1:
        def load_win(b):
            return x_ref[b].astype(jnp.float32)                  # (C0, W)
    else:
        # 128-aligned dynamic window (T is a multiple of 128 when n_tiles > 1).
        start = pl.multiple_of(pl.program_id(1) * T, 128)

        def load_win(b):
            return x_ref[b, :, pl.ds(start, W)].astype(jnp.float32)

    pad_w = S_pad - W
    pieces = []
    for b in range(NB):
        pieces.append(load_win(b))
        if b < NB - 1 and pad_w > 0:
            # 128-align the start of the next batch segment.
            pieces.append(jnp.zeros((C0, pad_w), jnp.float32))
    cur = pieces[0] if len(pieces) == 1 else jnp.concatenate(pieces, axis=1)
    # cur: (C0, (NB-1)*S_pad + W); batch b's real data starts at lane b*S_pad.

    # ---- layer stack on the packed slab (cross-batch columns are garbage and
    #      are discarded at unpack time; 'valid' convs never widen the window) ----
    idx = 0
    for i, (K, C_in, C_out) in enumerate(layer_dims):
        w = p_refs[idx][...]          # (C_out, K*C_in)
        bias = p_refs[idx + 1][...]   # (C_out, 1)
        idx += 2

        L_out_i = cur.shape[1] - (K - 1)
        if K == 1:
            xcol = cur
        else:
            # im2col: rows ordered k*C_in + c_in, matching w_flat's column order.
            xcol = jnp.concatenate([cur[:, k:k + L_out_i] for k in range(K)],
                                   axis=0)                       # (K*C_in, L_out_i)
        y = jnp.dot(w, xcol, preferred_element_type=jnp.float32) + bias

        if apply_post[i]:
            s = p_refs[idx][...]      # (C_out, 1)
            t = p_refs[idx + 1][...]
            idx += 2
            y = jnp.maximum(y, 0.0)   # ReLU
            # Dropout (eval mode) -> identity
            y = y * s + t             # BatchNorm1d (eval), folded scale/shift
        cur = y

    # ---- unpack: batch b's valid columns live at [b*S_pad, b*S_pad + T) ----
    for b in range(NB):
        o_ref[b] = cur[:, b * S_pad:b * S_pad + T].astype(o_ref.dtype)


# ----------------------------------------------------------------------------
# Wrapper
# ----------------------------------------------------------------------------
_L_TILE = 1024   # final-output L tile (multiple of 128 -> lane-dense stores)
_MAX_NB = 8      # max batches folded (lane-packed) per grid step


def conv1d_stack_forward(x_ncl, params):
    """Eval-mode Conv1dStack forward. x_ncl: (N, C_in, L) -> (N, C_out, L_out)."""
    N, C0, L = x_ncl.shape
    layer_dims = tuple((int(p["w_oik"].shape[2]),   # K
                        int(p["w_oik"].shape[1]),   # C_in
                        int(p["w_oik"].shape[0]))   # C_out
                       for p in params)
    num_layers = len(layer_dims)
    apply_post = tuple(i < num_layers - 1 for i in range(num_layers))
    R_total = sum(K - 1 for K, _, _ in layer_dims)
    L_out = L - R_total
    assert L_out > 0, "sequence too short for this kernel stack"
    C_last = layer_dims[-1][2]

    # L tiling of the final output; halo handled from the resident input block.
    if L_out <= _L_TILE:
        T, n_tiles = L_out, 1
    else:
        T = _L_TILE
        n_tiles = -(-L_out // T)
    Lp_out = T * n_tiles
    L_in_need = Lp_out + R_total
    if L_in_need > L:
        x_ncl = jnp.pad(x_ncl, ((0, 0), (0, 0), (0, L_in_need - L)))
    x_f32 = x_ncl.astype(jnp.float32)

    # Batch folding: NB batches per grid step, capped by a VMEM budget for the
    # double-buffered per-step input block and required to divide N evenly.
    per_batch_in_bytes = 2 * 4 * C0 * L_in_need
    nb_cap = max(1, (20 * 2**20) // per_batch_in_bytes)
    NB = 1
    for cand in (8, 4, 2, 1):
        if cand <= min(_MAX_NB, nb_cap) and N % cand == 0:
            NB = cand
            break

    W = T + R_total                 # per-batch input window for one L tile
    S_pad = _round_up(W, 128)       # 128-aligned batch segment stride in lanes

    # Flatten per-layer parameters (last layer carries no BN scale/shift).
    flat_args = []
    for i, p in enumerate(params):
        flat_args += [p["w_flat"], p["bias_col"]]
        if apply_post[i]:
            flat_args += [p["bn_scale_col"], p["bn_shift_col"]]

    in_specs = [pl.BlockSpec((NB, C0, L_in_need), lambda g, j: (g, 0, 0))]
    for a in flat_args:
        in_specs.append(pl.BlockSpec(a.shape, lambda g, j: (0, 0)))
    out_specs = pl.BlockSpec((NB, C_last, T), lambda g, j: (g, 0, j))

    kernel = functools.partial(
        _fused_stack_kernel, layer_dims=layer_dims, apply_post=apply_post,
        NB=NB, T=T, W=W, S_pad=S_pad, n_tiles=n_tiles)

    # Cost estimate + VMEM budget (per-generation safe: capped at 48 MiB).
    packed_w = (NB - 1) * S_pad + W
    flops = 0
    inter_bytes = 0
    width = packed_w
    for (K, Ci, Co) in layer_dims:
        width_o = width - (K - 1)
        flops += 2 * K * Ci * Co * width_o
        inter_bytes += 4 * width_o * (K * Ci + Co)
        width = width_o
    steps = (N // NB) * n_tiles
    flops *= steps
    param_bytes = sum(int(a.size) * 4 for a in flat_args)
    bytes_accessed = 4 * (int(x_f32.size) + N * C_last * Lp_out) + param_bytes
    vmem_need = (2 * 4 * NB * C0 * L_in_need        # double-buffered input blocks
                 + 2 * 4 * NB * C_last * T          # double-buffered output blocks
                 + 2 * param_bytes
                 + 4 * C0 * packed_w + inter_bytes  # packed slab + intermediates
                 + (2 << 20))
    vmem_limit = int(min(48 * 2**20, max(32 * 2**20, 2 * vmem_need)))

    out = pl.pallas_call(
        kernel,
        out_shape=jax.ShapeDtypeStruct((N, C_last, Lp_out), jnp.float32),
        grid_spec=pltpu.PrefetchScalarGridSpec(
            num_scalar_prefetch=0,
            grid=(N // NB, n_tiles),
            in_specs=in_specs,
            out_specs=out_specs,
        ),
        compiler_params=pltpu.CompilerParams(
            dimension_semantics=("parallel", "parallel"),
            vmem_limit_bytes=vmem_limit),
        cost_estimate=pl.CostEstimate(
            flops=int(flops), transcendentals=0,
            bytes_accessed=int(bytes_accessed)),
    )(x_f32, *flat_args)

    return out[:, :, :L_out]


# ----------------------------------------------------------------------------
# Parameter construction (deterministic synthetic init, eval-mode BN folded)
# ----------------------------------------------------------------------------
def make_params(key, channel_size, kernel_size, bn_eps=1e-5):
    num_layers = len(channel_size) - 1
    params = []
    for i in range(num_layers):
        c_in, c_out, K = channel_size[i], channel_size[i + 1], kernel_size[i]
        key, k1, k2, k3, k4, k5, k6 = jax.random.split(key, 7)
        # PyTorch Conv1d weight layout: (C_out, C_in, K)
        w_oik = jax.random.normal(k1, (c_out, c_in, K), jnp.float32) * 0.2
        bias = jax.random.normal(k2, (c_out,), jnp.float32) * 0.1
        # BatchNorm1d (eval): running stats + affine folded to scale/shift
        gamma = 1.0 + 0.1 * jax.random.normal(k3, (c_out,), jnp.float32)
        beta = 0.1 * jax.random.normal(k4, (c_out,), jnp.float32)
        r_mean = 0.1 * jax.random.normal(k5, (c_out,), jnp.float32)
        r_var = 0.5 + jnp.abs(jax.random.normal(k6, (c_out,), jnp.float32))
        inv_std = 1.0 / jnp.sqrt(r_var + bn_eps)
        bn_scale = gamma * inv_std
        bn_shift = beta - r_mean * bn_scale
        params.append(dict(
            w_oik=w_oik,
            # (C_out, K*C_in), column index = k*C_in + c_in (matches im2col)
            w_flat=jnp.transpose(w_oik, (0, 2, 1)).reshape(c_out, K * c_in),
            bias=bias,
            bias_col=bias.reshape(c_out, 1),
            bn_scale_col=bn_scale.reshape(c_out, 1),
            bn_shift_col=bn_shift.reshape(c_out, 1),
        ))
    return params


# ----------------------------------------------------------------------------
# Pure-JAX reference (mirrors the PyTorch forward in eval mode)
# ----------------------------------------------------------------------------
def reference_forward(x_ncl, params):
    num_layers = len(params)
    x = x_ncl
    for i, p in enumerate(params):
        x = jax.lax.conv_general_dilated(
            x, p["w_oik"], window_strides=(1,), padding="VALID",
            dimension_numbers=("NCH", "OIH", "NCH"))
        x = x + p["bias"][None, :, None]
        if i < num_layers - 1:
            x = jnp.maximum(x, 0.0)                      # ReLU
            # Dropout (eval) -> identity
            scale = p["bn_scale_col"][:, 0]
            shift = p["bn_shift_col"][:, 0]
            x = x * scale[None, :, None] + shift[None, :, None]
    return x


if __name__ == "__main__":
    # Small config: num_layers=3, channel_size=[4, 8, 16, 8], kernel_size=3
    channel_size = (4, 8, 16, 8)
    kernel_size = (3, 3, 3)
    N, L = 2, 16

    key = jax.random.PRNGKey(0)
    key, kx = jax.random.split(key)
    x = jax.random.normal(kx, (N, channel_size[0], L), jnp.float32)  # NCL

    params = make_params(key, channel_size, kernel_size)

    fwd = jax.jit(conv1d_stack_forward)
    out = jax.block_until_ready(fwd(x, params))
    ref = jax.block_until_ready(reference_forward(x, params))

    assert out.shape == ref.shape, (out.shape, ref.shape)
    err = float(jnp.max(jnp.abs(out - ref)))
    assert err < 1e-4, err
    print("KERNEL_OK")
</pallas_src>

<mosaic_0001>
module attributes {stable_mosaic.version = 11 : i64} {
  func.func @_fused_stack_kernel(%arg0: i32, %arg1: i32, %arg2: memref<2x4x16xf32, #tpu.memory_space<vmem>>, %arg3: memref<8x12xf32, #tpu.memory_space<vmem>>, %arg4: memref<8x1xf32, #tpu.memory_space<vmem>>, %arg5: memref<8x1xf32, #tpu.memory_space<vmem>>, %arg6: memref<8x1xf32, #tpu.memory_space<vmem>>, %arg7: memref<16x24xf32, #tpu.memory_space<vmem>>, %arg8: memref<16x1xf32, #tpu.memory_space<vmem>>, %arg9: memref<16x1xf32, #tpu.memory_space<vmem>>, %arg10: memref<16x1xf32, #tpu.memory_space<vmem>>, %arg11: memref<8x48xf32, #tpu.memory_space<vmem>>, %arg12: memref<8x1xf32, #tpu.memory_space<vmem>>, %arg13: memref<2x8x10xf32, #tpu.memory_space<vmem>>) attributes {dimension_semantics = [#tpu.dimension_semantics<parallel>, #tpu.dimension_semantics<parallel>], iteration_bounds = array<i64: 1, 1>, scalar_prefetch = 0 : i64, scratch_operands = 0 : i64, tpu.core_type = #tpu.core_type<tc>, window_params = [{transform_indices = @transform_0, window_bounds = array<i64: 2, 4, 16>}, {pipeline_mode = #tpu.pipeline_mode<synchronous>, transform_indices = @transform_1, window_bounds = array<i64: 8, 12>}, {pipeline_mode = #tpu.pipeline_mode<synchronous>, transform_indices = @transform_2, window_bounds = array<i64: 8, 1>}, {pipeline_mode = #tpu.pipeline_mode<synchronous>, transform_indices = @transform_3, window_bounds = array<i64: 8, 1>}, {pipeline_mode = #tpu.pipeline_mode<synchronous>, transform_indices = @transform_4, window_bounds = array<i64: 8, 1>}, {pipeline_mode = #tpu.pipeline_mode<synchronous>, transform_indices = @transform_5, window_bounds = array<i64: 16, 24>}, {pipeline_mode = #tpu.pipeline_mode<synchronous>, transform_indices = @transform_6, window_bounds = array<i64: 16, 1>}, {pipeline_mode = #tpu.pipeline_mode<synchronous>, transform_indices = @transform_7, window_bounds = array<i64: 16, 1>}, {pipeline_mode = #tpu.pipeline_mode<synchronous>, transform_indices = @transform_8, window_bounds = array<i64: 16, 1>}, {pipeline_mode = #tpu.pipeline_mode<synchronous>, transform_indices = @transform_9, window_bounds = array<i64: 8, 48>}, {pipeline_mode = #tpu.pipeline_mode<synchronous>, transform_indices = @transform_10, window_bounds = array<i64: 8, 1>}, {transform_indices = @transform_11, window_bounds = array<i64: 2, 8, 10>}]} {
    %c0 = arith.constant 0 : index
    %c0_0 = arith.constant 0 : index
    %c0_1 = arith.constant 0 : index
    %0 = vector.load %arg2[%c0, %c0_0, %c0_1] : memref<2x4x16xf32, #tpu.memory_space<vmem>>, vector<1x4x16xf32>
    %1 = vector.shape_cast %0 : vector<1x4x16xf32> to vector<4x16xf32>
    %cst = arith.constant 0.000000e+00 : f32
    %2 = vector.broadcast %cst : f32 to vector<4x112xf32>
    %c1 = arith.constant 1 : index
    %c0_2 = arith.constant 0 : index
    %c0_3 = arith.constant 0 : index
    %3 = vector.load %arg2[%c1, %c0_2, %c0_3] : memref<2x4x16xf32, #tpu.memory_space<vmem>>, vector<1x4x16xf32>
    %4 = vector.shape_cast %3 : vector<1x4x16xf32> to vector<4x16xf32>
    %5 = tpu.concatenate %1, %2, %4 in 1 : vector<4x16xf32>, vector<4x112xf32>, vector<4x16xf32> -> vector<4x144xf32>
    %c0_4 = arith.constant 0 : index
    %c0_5 = arith.constant 0 : index
    %6 = vector.load %arg3[%c0_4, %c0_5] : memref<8x12xf32, #tpu.memory_space<vmem>>, vector<8x12xf32>
    %c0_6 = arith.constant 0 : index
    %c0_7 = arith.constant 0 : index
    %7 = vector.load %arg4[%c0_6, %c0_7] : memref<8x1xf32, #tpu.memory_space<vmem>>, vector<8x1xf32>
    %8 = vector.extract_strided_slice %5 {offsets = [0, 0], sizes = [4, 142], strides = [1, 1]} : vector<4x144xf32> to vector<4x142xf32>
    %9 = vector.extract_strided_slice %5 {offsets = [0, 1], sizes = [4, 142], strides = [1, 1]} : vector<4x144xf32> to vector<4x142xf32>
    %10 = vector.extract_strided_slice %5 {offsets = [0, 2], sizes = [4, 142], strides = [1, 1]} : vector<4x144xf32> to vector<4x142xf32>
    %11 = tpu.concatenate %8, %9, %10 in 0 : vector<4x142xf32>, vector<4x142xf32>, vector<4x142xf32> -> vector<12x142xf32>
    %cst_8 = arith.constant dense<0.000000e+00> : vector<8x142xf32>
    %12 = tpu.matmul %6, %11, %cst_8 {dimension_numbers = #tpu.dot_dimension_numbers<[1], [0], [0], [1], [0, 0, 1, 1], [], []>} : vector<8x12xf32>, vector<12x142xf32>, vector<8x142xf32> -> vector<8x142xf32>
    %13 = vector.broadcast %7 : vector<8x1xf32> to vector<8x142xf32>
    %14 = arith.addf %12, %13 : vector<8x142xf32>
    %c0_9 = arith.constant 0 : index
    %c0_10 = arith.constant 0 : index
    %15 = vector.load %arg5[%c0_9, %c0_10] : memref<8x1xf32, #tpu.memory_space<vmem>>, vector<8x1xf32>
    %c0_11 = arith.constant 0 : index
    %c0_12 = arith.constant 0 : index
    %16 = vector.load %arg6[%c0_11, %c0_12] : memref<8x1xf32, #tpu.memory_space<vmem>>, vector<8x1xf32>
    %cst_13 = arith.constant 0.000000e+00 : f32
    %17 = vector.broadcast %cst_13 : f32 to vector<8x142xf32>
    %18 = arith.maximumf %14, %17 : vector<8x142xf32>
    %19 = vector.broadcast %15 : vector<8x1xf32> to vector<8x142xf32>
    %20 = arith.mulf %18, %19 : vector<8x142xf32>
    %21 = vector.broadcast %16 : vector<8x1xf32> to vector<8x142xf32>
    %22 = arith.addf %20, %21 : vector<8x142xf32>
    %c0_14 = arith.constant 0 : index
    %c0_15 = arith.constant 0 : index
    %23 = vector.load %arg7[%c0_14, %c0_15] : memref<16x24xf32, #tpu.memory_space<vmem>>, vector<16x24xf32>
    %c0_16 = arith.constant 0 : index
    %c0_17 = arith.constant 0 : index
    %24 = vector.load %arg8[%c0_16, %c0_17] : memref<16x1xf32, #tpu.memory_space<vmem>>, vector<16x1xf32>
    %25 = vector.extract_strided_slice %22 {offsets = [0, 0], sizes = [8, 140], strides = [1, 1]} : vector<8x142xf32> to vector<8x140xf32>
    %26 = vector.extract_strided_slice %22 {offsets = [0, 1], sizes = [8, 140], strides = [1, 1]} : vector<8x142xf32> to vector<8x140xf32>
    %27 = vector.extract_strided_slice %22 {offsets = [0, 2], sizes = [8, 140], strides = [1, 1]} : vector<8x142xf32> to vector<8x140xf32>
    %28 = tpu.concatenate %25, %26, %27 in 0 : vector<8x140xf32>, vector<8x140xf32>, vector<8x140xf32> -> vector<24x140xf32>
    %cst_18 = arith.constant dense<0.000000e+00> : vector<16x140xf32>
    %29 = tpu.matmul %23, %28, %cst_18 {dimension_numbers = #tpu.dot_dimension_numbers<[1], [0], [0], [1], [0, 0, 1, 1], [], []>} : vector<16x24xf32>, vector<24x140xf32>, vector<16x140xf32> -> vector<16x140xf32>
    %30 = vector.broadcast %24 : vector<16x1xf32> to vector<16x140xf32>
    %31 = arith.addf %29, %30 : vector<16x140xf32>
    %c0_19 = arith.constant 0 : index
    %c0_20 = arith.constant 0 : index
    %32 = vector.load %arg9[%c0_19, %c0_20] : memref<16x1xf32, #tpu.memory_space<vmem>>, vector<16x1xf32>
    %c0_21 = arith.constant 0 : index
    %c0_22 = arith.constant 0 : index
    %33 = vector.load %arg10[%c0_21, %c0_22] : memref<16x1xf32, #tpu.memory_space<vmem>>, vector<16x1xf32>
    %cst_23 = arith.constant 0.000000e+00 : f32
    %34 = vector.broadcast %cst_23 : f32 to vector<16x140xf32>
    %35 = arith.maximumf %31, %34 : vector<16x140xf32>
    %36 = vector.broadcast %32 : vector<16x1xf32> to vector<16x140xf32>
    %37 = arith.mulf %35, %36 : vector<16x140xf32>
    %38 = vector.broadcast %33 : vector<16x1xf32> to vector<16x140xf32>
    %39 = arith.addf %37, %38 : vector<16x140xf32>
    %c0_24 = arith.constant 0 : index
    %c0_25 = arith.constant 0 : index
    %40 = vector.load %arg11[%c0_24, %c0_25] : memref<8x48xf32, #tpu.memory_space<vmem>>, vector<8x48xf32>
    %c0_26 = arith.constant 0 : index
    %c0_27 = arith.constant 0 : index
    %41 = vector.load %arg12[%c0_26, %c0_27] : memref<8x1xf32, #tpu.memory_space<vmem>>, vector<8x1xf32>
    %42 = vector.extract_strided_slice %39 {offsets = [0, 0], sizes = [16, 138], strides = [1, 1]} : vector<16x140xf32> to vector<16x138xf32>
    %43 = vector.extract_strided_slice %39 {offsets = [0, 1], sizes = [16, 138], strides = [1, 1]} : vector<16x140xf32> to vector<16x138xf32>
    %44 = vector.extract_strided_slice %39 {offsets = [0, 2], sizes = [16, 138], strides = [1, 1]} : vector<16x140xf32> to vector<16x138xf32>
    %45 = tpu.concatenate %42, %43, %44 in 0 : vector<16x138xf32>, vector<16x138xf32>, vector<16x138xf32> -> vector<48x138xf32>
    %cst_28 = arith.constant dense<0.000000e+00> : vector<8x138xf32>
    %46 = tpu.matmul %40, %45, %cst_28 {dimension_numbers = #tpu.dot_dimension_numbers<[1], [0], [0], [1], [0, 0, 1, 1], [], []>} : vector<8x48xf32>, vector<48x138xf32>, vector<8x138xf32> -> vector<8x138xf32>
    %47 = vector.broadcast %41 : vector<8x1xf32> to vector<8x138xf32>
    %48 = arith.addf %46, %47 : vector<8x138xf32>
    %49 = vector.extract_strided_slice %48 {offsets = [0, 0], sizes = [8, 10], strides = [1, 1]} : vector<8x138xf32> to vector<8x10xf32>
    %c0_29 = arith.constant 0 : index
    %c0_30 = arith.constant 0 : index
    %c0_31 = arith.constant 0 : index
    %50 = vector.load %arg13[%c0_29, %c0_30, %c0_31] : memref<2x8x10xf32, #tpu.memory_space<vmem>>, vector<1x8x10xf32>
    %51 = vector.shape_cast %50 : vector<1x8x10xf32> to vector<8x10xf32>
    %52 = vector.shape_cast %49 : vector<8x10xf32> to vector<1x8x10xf32>
    tpu.vector_store %arg13[%c0_29, %c0_30, %c0_31], %52 {strides = array<i32>} : memref<2x8x10xf32, #tpu.memory_space<vmem>>, vector<1x8x10xf32>,
    %53 = vector.extract_strided_slice %48 {offsets = [0, 128], sizes = [8, 10], strides = [1, 1]} : vector<8x138xf32> to vector<8x10xf32>
    %c1_32 = arith.constant 1 : index
    %c0_33 = arith.constant 0 : index
    %c0_34 = arith.constant 0 : index
    %54 = vector.load %arg13[%c1_32, %c0_33, %c0_34] : memref<2x8x10xf32, #tpu.memory_space<vmem>>, vector<1x8x10xf32>
    %55 = vector.shape_cast %54 : vector<1x8x10xf32> to vector<8x10xf32>
    %56 = vector.shape_cast %53 : vector<8x10xf32> to vector<1x8x10xf32>
    tpu.vector_store %arg13[%c1_32, %c0_33, %c0_34], %56 {strides = array<i32>} : memref<2x8x10xf32, #tpu.memory_space<vmem>>, vector<1x8x10xf32>,
    return
  }
  func.func @transform_0(%arg0: i32, %arg1: i32) -> (i32, i32, i32) {
    %c0_i32 = arith.constant 0 : i32
    %c0_i32_0 = arith.constant 0 : i32
    %c0_i32_1 = arith.constant 0 : i32
    return %arg0, %c0_i32, %c0_i32_0 : i32, i32, i32
  }
  func.func @transform_1(%arg0: i32, %arg1: i32) -> (i32, i32) {
    %c0_i32 = arith.constant 0 : i32
    %c0_i32_0 = arith.constant 0 : i32
    %c0_i32_1 = arith.constant 0 : i32
    return %c0_i32, %c0_i32_0 : i32, i32
  }
  func.func @transform_2(%arg0: i32, %arg1: i32) -> (i32, i32) {
    %c0_i32 = arith.constant 0 : i32
    %c0_i32_0 = arith.constant 0 : i32
    %c0_i32_1 = arith.constant 0 : i32
    return %c0_i32, %c0_i32_0 : i32, i32
  }
  func.func @transform_3(%arg0: i32, %arg1: i32) -> (i32, i32) {
    %c0_i32 = arith.constant 0 : i32
    %c0_i32_0 = arith.constant 0 : i32
    %c0_i32_1 = arith.constant 0 : i32
    return %c0_i32, %c0_i32_0 : i32, i32
  }
  func.func @transform_4(%arg0: i32, %arg1: i32) -> (i32, i32) {
    %c0_i32 = arith.constant 0 : i32
    %c0_i32_0 = arith.constant 0 : i32
    %c0_i32_1 = arith.constant 0 : i32
    return %c0_i32, %c0_i32_0 : i32, i32
  }
  func.func @transform_5(%arg0: i32, %arg1: i32) -> (i32, i32) {
    %c0_i32 = arith.constant 0 : i32
    %c0_i32_0 = arith.constant 0 : i32
    %c0_i32_1 = arith.constant 0 : i32
    return %c0_i32, %c0_i32_0 : i32, i32
  }
  func.func @transform_6(%arg0: i32, %arg1: i32) -> (i32, i32) {
    %c0_i32 = arith.constant 0 : i32
    %c0_i32_0 = arith.constant 0 : i32
    %c0_i32_1 = arith.constant 0 : i32
    return %c0_i32, %c0_i32_0 : i32, i32
  }
  func.func @transform_7(%arg0: i32, %arg1: i32) -> (i32, i32) {
    %c0_i32 = arith.constant 0 : i32
    %c0_i32_0 = arith.constant 0 : i32
    %c0_i32_1 = arith.constant 0 : i32
    return %c0_i32, %c0_i32_0 : i32, i32
  }
  func.func @transform_8(%arg0: i32, %arg1: i32) -> (i32, i32) {
    %c0_i32 = arith.constant 0 : i32
    %c0_i32_0 = arith.constant 0 : i32
    %c0_i32_1 = arith.constant 0 : i32
    return %c0_i32, %c0_i32_0 : i32, i32
  }
  func.func @transform_9(%arg0: i32, %arg1: i32) -> (i32, i32) {
    %c0_i32 = arith.constant 0 : i32
    %c0_i32_0 = arith.constant 0 : i32
    %c0_i32_1 = arith.constant 0 : i32
    return %c0_i32, %c0_i32_0 : i32, i32
  }
  func.func @transform_10(%arg0: i32, %arg1: i32) -> (i32, i32) {
    %c0_i32 = arith.constant 0 : i32
    %c0_i32_0 = arith.constant 0 : i32
    %c0_i32_1 = arith.constant 0 : i32
    return %c0_i32, %c0_i32_0 : i32, i32
  }
  func.func @transform_11(%arg0: i32, %arg1: i32) -> (i32, i32, i32) {
    %c0_i32 = arith.constant 0 : i32
    %c0_i32_0 = arith.constant 0 : i32
    return %arg0, %c0_i32, %arg1 : i32, i32, i32
  }
}

</mosaic_0001>

<bundles_post_ra>
// kernel: conv1d_stack_forward.1
= control target key start
LH: loop header
LB: loop body
LE: loop exit
PB: predicated region body
PF: predicated region fallthrough
CT: control target
= control target key end

     0   :  { %vm42_vm0 = vcmask 130048   ;;  %s577_s0 = inlined_call_operand.vmem [shape: f32[2,4,16], index: 0, kind: input, shape index: {}]   ;;  %s578_s1 = inlined_call_operand.vmem [shape: f32[8,12], index: 1, kind: input, shape index: {}]   ;;  %s579_s2 = inlined_call_operand.vmem [shape: f32[8,1], index: 2, kind: input, shape index: {}]   ;;  %s580_s3 = inlined_call_operand.vmem [shape: f32[8,1], index: 3, kind: input, shape index: {}]   ;;  %s581_s4 = inlined_call_operand.vmem [shape: f32[8,1], index: 4, kind: input, shape index: {}]   ;;  %s582_s5 = inlined_call_operand.vmem [shape: f32[16,24], index: 5, kind: input, shape index: {}]   ;;  %s583_s6 = inlined_call_operand.vmem [shape: f32[16,1], index: 6, kind: input, shape index: {}]   ;;  %s584_s7 = inlined_call_operand.vmem [shape: f32[16,1], index: 7, kind: input, shape index: {}]   ;;  %s585_s8 = inlined_call_operand.vmem [shape: f32[16,1], index: 8, kind: input, shape index: {}]   ;;  %s586_s9 = inlined_call_operand.vmem [shape: f32[8,48], index: 9, kind: input, shape index: {}]   ;;  %s587_s10 = inlined_call_operand.vmem [shape: f32[8,1], index: 10, kind: input, shape index: {}]   ;;  %s588_s11 = inlined_call_operand.hbm [shape: f32[2,8,10], index: 11, kind: output, shape index: {}]  }
   0x1   :  { %v39_v0 = vld [vmem:[%s577_s0] sm:$0xf]  ;;  %v362_v1 = vld [vmem:[%s577_s0 + $0x4] sm:$0xf] }
   0x2   :  { %v43_v2 = vsel %vm42_vm0, %v39_v0, 0.0  ;;  %v49_v3 = vrot.slane %v362_v1, 4 }
   0x3   :  { %16 = vsyncpa [#allocation3], 0  ;;  %s443_s21 = smov 126   ;;  %v48_v4 = vrot.slane %v43_v2, 4  ;;  %s444_s22 = smov 127   ;;  %v445_v6 = vmov 0  }
   0x4   :  { %58 = vrot.lane.b32.xlu0 %v43_v2, %s443_s21  ;;  %385 = vset.pattern.permute.xlu2 %v445_v6  ;;  %v120_v7 = vld [vmem:[%s580_s3] sm:$0xff]  ;;  %v141_v10 = vld [vmem:[%s583_s6 + $0x8] sm:$0xff]  ;;  %vm54_vm1 = vcmask 1039360   ;;  %vm64_vm2 = vcmask 1043456   ;;  %vm62_vm3 = vcmask 1031168   ;;  %vm72_vm4 = vcmask 97280  }
   0x5   :  { %v379_v5 = vpack.i.bf16 %v49_v3, %v48_v4  ;;  %384 = vset.pattern.permute.xlu1 %v445_v6  ;;  %v45_v8 = vld [vmem:[%s579_s2] sm:$0xff]  ;;  %126 = vperm.xlu2 %385, %v120_v7   ;;  %v222_v37 = vld [vmem:[%s584_s7 + $0x8] sm:$0xff]  ;;  %vm168_vm5 = vcmask 195584   ;;  %vm296_vm6 = vcmask 392192   ;;  %s350_s25 = sshll.u32 %s588_s11, 4  ;;  %vm340_vm7 = vcmask 80896   ;;  %s351_s25 = int_to_ptr.hbm [resolvable:$true] %s350_s25 }
   0x6   :  { %396 = vset.pattern.permute.xlu0 %v445_v6  ;;  %v121_v9 = vld [vmem:[%s581_s4] sm:$0xff]  ;;  %v224_v38 = vld [vmem:[%s585_s8 + $0x8] sm:$0xff]  ;;  %s448_s26 = smov 8  }
   0x7   :  { %380 = vrot.lane.b32.xlu1 %v379_v5, %s444_s22  ;;  %v221_v12 = vld [vmem:[%s584_s7] sm:$0xff]  ;;  %v139_v49 = vld [vmem:[%s582_s5 + $0x8] sm:$0xff] }
   0x8   :  { %v44_v21 = vld [vmem:[%s578_s1] sm:$0xff] }
   0x9   :  { %v223_v22 = vld [vmem:[%s585_s8] sm:$0xff] }
   0xa   :  { %v140_v39 = vld [vmem:[%s583_s6] sm:$0xff] }
   0xb   :  { %v138_v48 = vld [vmem:[%s582_s5] sm:$0xff] }
   0xc   :  { %60 = vrot.lane.b32.xlu0 %v362_v1, %s443_s21 }
   0xd   :  { %133 = vperm.xlu2 %385, %v121_v9  }
   0xf   :  { %69 = vperm.xlu1 %384, %v45_v8  }
  0x15   :  { %165 = vperm.xlu2 %385, %v141_v10  }
  0x1d   :  { %231 = vperm.xlu2 %385, %v221_v12  }
  0x25   :  { %245 = vperm.xlu2 %385, %v223_v22  }
  0x5f   :  { %v127_v23 = vpop.permute.xlu2 %126 }
  0x67   :  { %v134_v32 = vpop.permute.xlu2 %133 }
  0x6f   :  { %v166_v50 = vpop.permute.xlu2 %165 }
  0x76   :  { %v59_v11 = vpop.permute.xlu0 %58 }
  0x77   :  { %v232_v51 = vpop.permute.xlu2 %231 }
  0x79   :  { %v381_v13 = vpop.permute.xlu1 %380 }
  0x7a   :  { %v383_v14 = vunpack.i.h.bf16 %v381_v13  ;;  %v382_v15 = vunpack.i.l.bf16 %v381_v13 }
  0x7c   :  { %v55_v16 = vsel %vm54_vm1, %v382_v15, %v383_v14  ;;  %v66_v18 = vsel %vm64_vm2, %v362_v1, %v383_v14  ;;  %v258_v14 = vld [vmem:[%s587_s10] sm:$0xff] }
  0x7d   :  { %v65_v20 = vsel %vm64_vm2, %v43_v2, %v55_v16 }
  0x7e   :  { %v61_v17 = vpop.permute.xlu0 %60 }
  0x7f   :  { %365 = vmatpush.msk.msra.mxu1 %vm64_vm2, %v61_v17  ;;  %v63_v19 = vsel %vm62_vm3, %v59_v11, %v61_v17  ;;  %v246_v61 = vpop.permute.xlu2 %245 }
  0x80   :  { %363 = vmatpush.msk.msra.mxu0 %vm64_vm2, %v63_v19 }
  0x81   :  { %115 = vmatpush.msra.mxu1 %v66_v18  ;;  %v70_v24 = vpop.permute.xlu1 %69 }
  0x82   :  { %95 = vmatpush.msra.mxu0 %v65_v20  ;;  %366 = vmatmul.msk.f32.vlgmr.msra.gmra.mxu1 %vm72_vm4, %v44_v21 }
  0x83   :  { %364 = vmatmul.msk.f32.vlgmr.msra.gmra.mxu0 %vm72_vm4, %v44_v21 }
  0xff   :  { %v117_v25 = vpop.f32.mrf.mxu1 }
 0x100   :  { %v118_v26 = vadd.f32 %v117_v25, %v70_v24  ;;  %v97_v27 = vpop.f32.mrf.mxu0 }
 0x101   :  { %v98_v28 = vadd.f32 %v97_v27, %v70_v24 }
 0x102   :  { %v123_v29 = vmax.f32 %v118_v26, 0.0 }
 0x103   :  { %v122_v30 = vmax.f32 %v98_v28, 0.0 }
 0x104   :  { %v130_v31 = vmul.f32 %v127_v23, %v123_v29 }
 0x105   :  { %v129_v33 = vmul.f32 %v127_v23, %v122_v30 }
 0x106   :  { %v137_v34 = vadd.f32 %v134_v32, %v130_v31  ;;  %v257_v31 = vld [vmem:[%s586_s9] sm:$0xff]  ;;  %s447_s9 = smov 128  }
 0x107   :  { %v136_v35 = vadd.f32 %v134_v32, %v129_v33 }
 0x109   :  { %v391_v36 = vpack.i.bf16 %v137_v34, %v136_v35 }
 0x10b   :  { %392 = vrot.lane.b32.xlu1 %v391_v36, %s444_s22  ;;  %387 = vrot.lane.b32.xlu0 %v391_v36, %s443_s21 }
 0x113   :  { %236 = vperm.xlu1 %384, %v222_v37   ;;  %160 = vperm.xlu0 %396, %v140_v39  }
 0x11b   :  { %250 = vperm.xlu1 %384, %v224_v38  }
 0x17d   :  { %v393_v40 = vpop.permute.xlu1 %392  ;;  %v388_v41 = vpop.permute.xlu0 %387 }
 0x17e   :  { %v394_v42 = vunpack.i.l.bf16 %v393_v40  ;;  %v389_v43 = vunpack.i.l.bf16 %v388_v41  ;;  %v390_v44 = vunpack.i.h.bf16 %v388_v41  ;;  %v395_v45 = vunpack.i.h.bf16 %v393_v40 }
 0x180   :  { %211 = vmatpush.msra.mxu3 %v390_v44  ;;  %v155_v46 = vsel %vm62_vm3, %v389_v43, %v390_v44  ;;  %v148_v47 = vsel %vm54_vm1, %v394_v42, %v395_v45 }
 0x181   :  { %188 = vmatpush.msra.mxu2 %v155_v46 }
 0x182   :  { %212 = vmatpush.msra.mxu3 %v395_v45 }
 0x183   :  { %189 = vmatpush.msra.mxu2 %v148_v47 }
 0x184   :  { %213 = vmatpush.msra.mxu3 %v137_v34 }
 0x185   :  { %190 = vmatpush.msra.mxu2 %v136_v35  ;;  %369 = vmatmul.msk.f32.vlgmr.msra.gmra.mxu3 %vm168_vm5, %v138_v48  ;;  %v161_v52 = vpop.permute.xlu0 %160  ;;  %v237_v58 = vpop.permute.xlu1 %236 }
 0x186   :  { %367 = vmatmul.msk.f32.vlgmr.msra.gmra.mxu2 %vm168_vm5, %v138_v48 }
 0x18d   :  { %370 = vmatmul.msk.f32.gmra.mxu3 %vm168_vm5, %v139_v49  ;;  %v251_v9 = vpop.permute.xlu1 %250 }
 0x18e   :  { %368 = vmatmul.msk.f32.gmra.mxu2 %vm168_vm5, %v139_v49 }
 0x208   :  { %v215_v53 = vpop.f32.mrf.mxu3 }
 0x209   :  { %v216_v54 = vadd.f32 %v215_v53, %v161_v52  ;;  %v192_v55 = vpop.f32.mrf.mxu2 }
 0x20a   :  { %v193_v56 = vadd.f32 %v192_v55, %v161_v52 }
 0x20b   :  { %v226_v57 = vmax.f32 %v216_v54, 0.0 }
 0x20c   :  { %v225_v59 = vmax.f32 %v193_v56, 0.0 }
 0x20d   :  { %v240_v60 = vmul.f32 %v232_v51, %v226_v57 }
 0x20e   :  { %v239_v62 = vmul.f32 %v232_v51, %v225_v59 }
 0x20f   :  { %v254_v63 = vadd.f32 %v246_v61, %v240_v60 }
 0x210   :  { %v253_v0 = vadd.f32 %v246_v61, %v239_v62  ;;  %v218_v1 = vpop.f32.mrf.mxu3 }
 0x211   :  { %v219_v2 = vadd.f32 %v218_v1, %v166_v50  ;;  %v195_v3 = vpop.f32.mrf.mxu2 }
 0x212   :  { %v196_v4 = vadd.f32 %v195_v3, %v166_v50  ;;  %v397_v5 = vpack.i.bf16 %v254_v63, %v253_v0 }
 0x213   :  { %v228_v6 = vmax.f32 %v219_v2, 0.0 }
 0x214   :  { %v227_v7 = vmax.f32 %v196_v4, 0.0  ;;  %398 = vrot.lane.b32.xlu1 %v397_v5, %s443_s21 }
 0x215   :  { %v242_v8 = vmul.f32 %v237_v58, %v228_v6 }
 0x216   :  { %v241_v10 = vmul.f32 %v237_v58, %v227_v7 }
 0x217   :  { %v256_v11 = vadd.f32 %v251_v9, %v242_v8 }
 0x218   :  { %v255_v12 = vadd.f32 %v251_v9, %v241_v10 }
 0x21a   :  { %v407_v13 = vpack.i.bf16 %v256_v11, %v255_v12 }
 0x21c   :  { %408 = vrot.lane.b32.xlu2 %v407_v13, %s444_s22  ;;  %403 = vrot.lane.b32.xlu0 %v407_v13, %s443_s21 }
 0x21d   :  { %293 = vperm.xlu1 %384, %v258_v14  }
 0x224   :  { %413 = vrot.lane.b32.xlu0 %v397_v5, %s444_s22  ;;  %s446_s22 = smov [#allocation2]  }
 0x225   :  { %s348_s23 = sshll.u32 %s446_s22, 4  ;;  %s349_s23 = int_to_ptr.vmem [resolvable:$true] %s348_s23 }
 0x276   :  { %v409_v16 = vpop.permute.xlu2 %408 }
 0x277   :  { %v411_v22 = vunpack.i.h.bf16 %v409_v16  ;;  %v410_v23 = vunpack.i.l.bf16 %v409_v16 }
 0x279   :  { %v272_v26 = vsel %vm54_vm1, %v410_v23, %v411_v22 }
 0x286   :  { %v399_v15 = vpop.permute.xlu1 %398 }
 0x287   :  { %v400_v18 = vunpack.i.l.bf16 %v399_v15  ;;  %v401_v21 = vunpack.i.h.bf16 %v399_v15 }
 0x289   :  { %v285_v25 = vsel %vm62_vm3, %v400_v18, %v401_v21 }
 0x28e   :  { %v404_v17 = vpop.permute.xlu0 %403 }
 0x28f   :  { %v405_v19 = vunpack.i.l.bf16 %v404_v17  ;;  %v406_v20 = vunpack.i.h.bf16 %v404_v17  ;;  %v294_v32 = vpop.permute.xlu1 %293 }
 0x291   :  { %330 = vmatpush.msrb.mxu1 %v406_v20  ;;  %v286_v24 = vsel %vm62_vm3, %v405_v19, %v406_v20 }
 0x292   :  { %310 = vmatpush.msrb.mxu0 %v286_v24 }
 0x293   :  { %331 = vmatpush.msrb.mxu1 %v401_v21 }
 0x294   :  { %311 = vmatpush.msrb.mxu0 %v285_v25 }
 0x295   :  { %332 = vmatpush.msrb.mxu1 %v411_v22 }
 0x296   :  { %v414_v27 = vpop.permute.xlu0 %413  ;;  %312 = vmatpush.msrb.mxu0 %v272_v26 }
 0x297   :  { %v416_v28 = vunpack.i.h.bf16 %v414_v27  ;;  %v415_v29 = vunpack.i.l.bf16 %v414_v27 }
 0x299   :  { %333 = vmatpush.msrb.mxu1 %v416_v28  ;;  %v271_v30 = vsel %vm54_vm1, %v415_v29, %v416_v28 }
 0x29a   :  { %313 = vmatpush.msrb.mxu0 %v271_v30 }
 0x29b   :  { %334 = vmatpush.msrb.mxu1 %v256_v11 }
 0x29c   :  { %314 = vmatpush.msrb.mxu0 %v255_v12 }
 0x29d   :  { %335 = vmatpush.msrb.mxu1 %v254_v63 }
 0x29e   :  { %315 = vmatpush.msrb.mxu0 %v253_v0  ;;  %372 = vmatmul.msk.f32.vlgmr.msrb.gmra.mxu1 %vm296_vm6, %v257_v31 }
 0x29f   :  { %371 = vmatmul.msk.f32.vlgmr.msrb.gmra.mxu0 %vm296_vm6, %v257_v31 }
 0x31b   :  { %v337_v33 = vpop.f32.mrf.mxu1 }
 0x31c   :  { %v338_v34 = vadd.f32 %v337_v33, %v294_v32  ;;  %v317_v35 = vpop.f32.mrf.mxu0 }
 0x31d   :  { %v318_v36 = vadd.f32 %v317_v35, %v294_v32 }
 0x31e   :  { %343 = vst.msk [vmem:[#allocation2 + $0x8] sm:$0xff] %vm340_vm7, %v338_v34 }
 0x31f   :  { %341 = vst.msk [vmem:[#allocation2] sm:$0xff] %vm340_vm7, %v318_v36 }
 0x320   :  { %356 = dma.vmem_to_hbm [thread:$0]  %s349_s23, 256, %s351_s25, [#allocation3], %s447_s9, %s447_s9, %s448_s26  }
 0x321   :  { %441 = dma.done.wait [#allocation3], 256  }
 0x322   :  { %442 = vsyncadd [#allocation3], 4294967040 }
 0x323   :  { %361 = vsyncpa [#allocation3], 1 }

</bundles_post_ra>
